<compile_context>
chip_gen: v6e
topology: v6e:2x2x1
jax: 0.10.0
libtpu: 0.0.40
codegen_flags: <defaults>
</compile_context>

<pallas_src>
import jax
import jax.numpy as jnp
from jax.experimental import pallas as pl
from jax.experimental.pallas import tpu as pltpu


def _round_up(x, m):
    return ((x + m - 1) // m) * m


def _cdiv(a, b):
    return (a + b - 1) // b


def te_mlp_kernel(idx_ref, drugs_ref, table_ref,
                  w1d_ref, b1_ref, w2_ref, b2_ref, w3_ref, b3_ref, out_ref):
    """One batch tile of: gather(folded) -> Linear/ReLU -> Linear/ReLU -> Linear."""
    tm = drugs_ref.shape[0]
    nc_pad = table_ref.shape[0]

    # Fused cell-line gather + layer-1 contribution.
    # table = cellline_expression @ W1_ce was precomputed in the wrapper, so
    # one-hot @ table is exactly the cell-line part of layer 1 (the one-hot
    # selection is exact: 0/1 are representable in bf16, zero rows are inert).
    idx = idx_ref[...]                                             # (TM, 1) int32
    onehot = (jax.lax.broadcasted_iota(jnp.int32, (tm, nc_pad), 1) == idx)
    ce_h = jnp.dot(onehot.astype(jnp.bfloat16), table_ref[...],
                   preferred_element_type=jnp.float32)             # (TM, H1) f32

    # Layer 1: single K = 2*in_feats matmul over [d1 | d2] against the
    # stacked [W1_d1; W1_d2] slab, plus the cell-line contribution.
    h = jnp.dot(drugs_ref[...].astype(jnp.bfloat16), w1d_ref[...],
                preferred_element_type=jnp.float32)
    h = jnp.maximum(h + ce_h + b1_ref[...], 0.0)                   # ReLU (+Dropout(0)=id)

    # Layer 2
    h = jnp.dot(h.astype(jnp.bfloat16), w2_ref[...],
                preferred_element_type=jnp.float32) + b2_ref[...]
    h = jnp.maximum(h, 0.0)                                        # ReLU (+Dropout(0)=id)

    # Layer 3 (no activation)
    out_ref[...] = (jnp.dot(h.astype(jnp.bfloat16), w3_ref[...],
                            preferred_element_type=jnp.float32) + b3_ref[...])


def therapeutic_effect_predict(drug_embedding1, drug_embedding2, cellline_idx,
                               cellline_expression, params, *, tile_m=1024):
    """Wrapper: one-time weight prep + batch-tiled pallas_call."""
    w1, b1, w2, b2, w3, b3 = params
    batch, in_feats = drug_embedding1.shape
    nc, emd_feats = cellline_expression.shape
    out_dim = w3.shape[1]
    assert w1.shape[0] == 2 * in_feats + emd_feats, \
        "W1 input dim must equal 2*in_feats + emd_feats"

    f32 = jnp.float32
    bf16 = jnp.bfloat16

    # ---- One-time weight prep (outside the kernel) -------------------------
    # Concat folded into W1: drug part stays a weight slab; the cell-line part
    # is pre-multiplied into a per-cell-line table (f32 matmul, then bf16).
    w1_drugs = w1[:2 * in_feats].astype(bf16)                      # (2*in, H1)
    w1_ce = w1[2 * in_feats:]                                      # (emd, H1)
    table = jnp.dot(cellline_expression.astype(f32),
                    w1_ce.astype(f32)).astype(bf16)                # (NC, H1)

    w2_bf = w2.astype(bf16)
    w3_bf = w3.astype(bf16)
    b1 = b1.reshape(1, -1).astype(f32)
    b2 = b2.reshape(1, -1).astype(f32)
    b3 = b3.reshape(1, -1).astype(f32)

    # Sublane-align the table's row count (contraction dim of the one-hot
    # matmul); padded zero rows are never selected by a valid index.
    nc_pad = _round_up(nc, 8)
    if nc_pad != nc:
        table = jnp.pad(table, ((0, nc_pad - nc), (0, 0)))

    # ---- Per-call input prep ------------------------------------------------
    # Pre-concatenate the two drug embeddings into a single streamed input
    # (one DMA stream, one K=2*in_feats layer-1 matmul).  Keep the producer's
    # dtype (bf16 producers halve input HBM traffic); the kernel casts to bf16.
    drugs = jnp.concatenate([drug_embedding1, drug_embedding2], axis=1)
    idx = cellline_idx.astype(jnp.int32).reshape(batch, 1)

    # ---- Batch tiling (bounded padding waste, >=2 steps for megacore) ------
    num_tiles = max(1, _cdiv(batch, tile_m))
    if batch > 64 and num_tiles == 1:
        num_tiles = 2      # v7x: give both TensorCores a grid step
    tm = _round_up(_cdiv(batch, num_tiles), 8)
    padded = _round_up(batch, tm)
    if padded != batch:
        pad = padded - batch
        # Padded rows run with idx=0 (valid table row) and zero drug features;
        # their outputs are garbage by design and are sliced off below.
        drugs = jnp.pad(drugs, ((0, pad), (0, 0)))
        idx = jnp.pad(idx, ((0, pad), (0, 0)))

    grid = (padded // tm,)

    def row_spec(cols):
        return pl.BlockSpec((tm, cols), lambda i: (i, 0))

    def const_spec(arr):
        return pl.BlockSpec(arr.shape, lambda i: (0, 0))

    out = pl.pallas_call(
        te_mlp_kernel,
        out_shape=jax.ShapeDtypeStruct((padded, out_dim), f32),
        grid=grid,
        in_specs=[
            row_spec(1),                   # cell-line indices (per-row)
            row_spec(2 * in_feats),        # [drug1 | drug2] (per-row)
            const_spec(table),             # expr @ W1_ce table (resident)
            const_spec(w1_drugs),          # stacked W1 drug slab (resident)
            const_spec(b1),
            const_spec(w2_bf), const_spec(b2),
            const_spec(w3_bf), const_spec(b3),
        ],
        out_specs=row_spec(out_dim),
        compiler_params=pltpu.CompilerParams(
            dimension_semantics=("parallel",)),    # megacore split on v7x
    )(idx, drugs, table, w1_drugs, b1, w2_bf, b2, w3_bf, b3)

    return out[:batch]


def init_params(key, in_feats, emd_feats, layer_list):
    """Deterministic synthetic parameters (shapes match the PyTorch module)."""
    dims = [2 * in_feats + emd_feats] + list(layer_list)
    params = []
    for i in range(len(layer_list)):
        key, kw, kb = jax.random.split(key, 3)
        fan_in = dims[i]
        scale = 1.0 / jnp.sqrt(jnp.float32(fan_in))
        w = jax.random.uniform(kw, (dims[i], dims[i + 1]),
                               jnp.float32, -scale, scale)
        b = jax.random.uniform(kb, (1, dims[i + 1]),
                               jnp.float32, -scale, scale)
        params += [w, b]
    return tuple(params)


def _reference(drug1, drug2, cellline_idx, cellline_expression, params):
    """Pure-JAX f32 reference of the PyTorch forward pass."""
    ce = cellline_expression[cellline_idx]
    x = jnp.concatenate([drug1, drug2, ce], axis=1)
    w1, b1, w2, b2, w3, b3 = params
    h = jnp.maximum(x @ w1 + b1, 0.0)
    h = jnp.maximum(h @ w2 + b2, 0.0)
    return h @ w3 + b3


if __name__ == "__main__":
    # Small shapes consistent with the module:
    #   batch=8, in_feats=32 (per-drug embedding), expression dim=16
    #   (=> emd_feats=16 since whether_CCLE=[True, True]), layer_list=[64, 32, 1]
    batch = 8
    in_feats = 32
    num_celllines = 4
    expr_dim = 16
    layer_list = [64, 32, 1]

    key = jax.random.PRNGKey(0)
    k1, k2, k3, k4, kp = jax.random.split(key, 5)

    drug_embedding1 = jax.random.normal(k1, (batch, in_feats), jnp.float32)
    drug_embedding2 = jax.random.normal(k2, (batch, in_feats), jnp.float32)
    cellline_expression = jax.random.normal(k3, (num_celllines, expr_dim),
                                            jnp.float32)
    cellline_idx = jax.random.randint(k4, (batch,), 0, num_celllines)

    params = init_params(kp, in_feats, expr_dim, layer_list)

    out = therapeutic_effect_predict(drug_embedding1, drug_embedding2,
                                     cellline_idx, cellline_expression, params)
    out = jax.block_until_ready(out)

    ref = _reference(drug_embedding1, drug_embedding2, cellline_idx,
                     cellline_expression, params)
    assert out.shape == (batch, layer_list[-1])
    # Tolerance loosened vs. the pure-f32 reference because matmul operands
    # are bf16 (f32 accumulation) -- documented inference-precision tradeoff.
    assert jnp.allclose(out, ref, atol=5e-2, rtol=5e-2), \
        f"max abs diff {jnp.max(jnp.abs(out - ref))}"

    print("KERNEL_OK")
</pallas_src>

<mosaic_0001>
module attributes {stable_mosaic.version = 11 : i64} {
  func.func @te_mlp_kernel(%arg0: i32, %arg1: memref<8x1xi32, #tpu.memory_space<vmem>>, %arg2: memref<8x64xf32, #tpu.memory_space<vmem>>, %arg3: memref<8x64xbf16, #tpu.memory_space<vmem>>, %arg4: memref<64x64xbf16, #tpu.memory_space<vmem>>, %arg5: memref<1x64xf32, #tpu.memory_space<vmem>>, %arg6: memref<64x32xbf16, #tpu.memory_space<vmem>>, %arg7: memref<1x32xf32, #tpu.memory_space<vmem>>, %arg8: memref<32x1xbf16, #tpu.memory_space<vmem>>, %arg9: memref<1x1xf32, #tpu.memory_space<vmem>>, %arg10: memref<8x1xf32, #tpu.memory_space<vmem>>) attributes {dimension_semantics = [#tpu.dimension_semantics<parallel>], iteration_bounds = array<i64: 1>, scalar_prefetch = 0 : i64, scratch_operands = 0 : i64, tpu.core_type = #tpu.core_type<tc>, window_params = [{transform_indices = @transform_0, window_bounds = array<i64: 8, 1>}, {transform_indices = @transform_1, window_bounds = array<i64: 8, 64>}, {pipeline_mode = #tpu.pipeline_mode<synchronous>, transform_indices = @transform_2, window_bounds = array<i64: 8, 64>}, {pipeline_mode = #tpu.pipeline_mode<synchronous>, transform_indices = @transform_3, window_bounds = array<i64: 64, 64>}, {pipeline_mode = #tpu.pipeline_mode<synchronous>, transform_indices = @transform_4, window_bounds = array<i64: 1, 64>}, {pipeline_mode = #tpu.pipeline_mode<synchronous>, transform_indices = @transform_5, window_bounds = array<i64: 64, 32>}, {pipeline_mode = #tpu.pipeline_mode<synchronous>, transform_indices = @transform_6, window_bounds = array<i64: 1, 32>}, {pipeline_mode = #tpu.pipeline_mode<synchronous>, transform_indices = @transform_7, window_bounds = array<i64: 32, 1>}, {pipeline_mode = #tpu.pipeline_mode<synchronous>, transform_indices = @transform_8, window_bounds = array<i64: 1, 1>}, {transform_indices = @transform_9, window_bounds = array<i64: 8, 1>}]} {
    %c0 = arith.constant 0 : index
    %c0_0 = arith.constant 0 : index
    %0 = vector.load %arg1[%c0, %c0_0] : memref<8x1xi32, #tpu.memory_space<vmem>>, vector<8x1xi32>
    %1 = tpu.iota {dimensions = array<i32: 1>} : vector<8x8xi32>
    %2 = vector.broadcast %0 : vector<8x1xi32> to vector<8x8xi32>
    %3 = arith.cmpi eq, %1, %2 : vector<8x8xi32>
    %4 = arith.extui %3 : vector<8x8xi1> to vector<8x8xi32>
    %5 = arith.sitofp %4 : vector<8x8xi32> to vector<8x8xf32>
    %6 = arith.truncf %5 : vector<8x8xf32> to vector<8x8xbf16>
    %c0_1 = arith.constant 0 : index
    %c0_2 = arith.constant 0 : index
    %7 = vector.load %arg3[%c0_1, %c0_2] : memref<8x64xbf16, #tpu.memory_space<vmem>>, vector<8x64xbf16>
    %cst = arith.constant dense<0.000000e+00> : vector<8x64xf32>
    %8 = tpu.matmul %6, %7, %cst {dimension_numbers = #tpu.dot_dimension_numbers<[1], [0], [0], [1], [0, 0, 1, 1], [], []>} : vector<8x8xbf16>, vector<8x64xbf16>, vector<8x64xf32> -> vector<8x64xf32>
    %c0_3 = arith.constant 0 : index
    %c0_4 = arith.constant 0 : index
    %9 = vector.load %arg2[%c0_3, %c0_4] : memref<8x64xf32, #tpu.memory_space<vmem>>, vector<8x64xf32>
    %10 = arith.truncf %9 : vector<8x64xf32> to vector<8x64xbf16>
    %c0_5 = arith.constant 0 : index
    %c0_6 = arith.constant 0 : index
    %11 = vector.load %arg4[%c0_5, %c0_6] : memref<64x64xbf16, #tpu.memory_space<vmem>>, vector<64x64xbf16>
    %cst_7 = arith.constant dense<0.000000e+00> : vector<8x64xf32>
    %12 = tpu.matmul %10, %11, %cst_7 {dimension_numbers = #tpu.dot_dimension_numbers<[1], [0], [0], [1], [0, 0, 1, 1], [], []>} : vector<8x64xbf16>, vector<64x64xbf16>, vector<8x64xf32> -> vector<8x64xf32>
    %13 = arith.addf %12, %8 : vector<8x64xf32>
    %c0_8 = arith.constant 0 : index
    %c0_9 = arith.constant 0 : index
    %14 = vector.load %arg5[%c0_8, %c0_9] : memref<1x64xf32, #tpu.memory_space<vmem>>, vector<1x64xf32>
    %15 = vector.broadcast %14 : vector<1x64xf32> to vector<8x64xf32>
    %16 = arith.addf %13, %15 : vector<8x64xf32>
    %cst_10 = arith.constant 0.000000e+00 : f32
    %17 = vector.broadcast %cst_10 : f32 to vector<8x64xf32>
    %18 = arith.maximumf %16, %17 : vector<8x64xf32>
    %19 = arith.truncf %18 : vector<8x64xf32> to vector<8x64xbf16>
    %c0_11 = arith.constant 0 : index
    %c0_12 = arith.constant 0 : index
    %20 = vector.load %arg6[%c0_11, %c0_12] : memref<64x32xbf16, #tpu.memory_space<vmem>>, vector<64x32xbf16>
    %cst_13 = arith.constant dense<0.000000e+00> : vector<8x32xf32>
    %21 = tpu.matmul %19, %20, %cst_13 {dimension_numbers = #tpu.dot_dimension_numbers<[1], [0], [0], [1], [0, 0, 1, 1], [], []>} : vector<8x64xbf16>, vector<64x32xbf16>, vector<8x32xf32> -> vector<8x32xf32>
    %c0_14 = arith.constant 0 : index
    %c0_15 = arith.constant 0 : index
    %22 = vector.load %arg7[%c0_14, %c0_15] : memref<1x32xf32, #tpu.memory_space<vmem>>, vector<1x32xf32>
    %23 = vector.broadcast %22 : vector<1x32xf32> to vector<8x32xf32>
    %24 = arith.addf %21, %23 : vector<8x32xf32>
    %cst_16 = arith.constant 0.000000e+00 : f32
    %25 = vector.broadcast %cst_16 : f32 to vector<8x32xf32>
    %26 = arith.maximumf %24, %25 : vector<8x32xf32>
    %27 = arith.truncf %26 : vector<8x32xf32> to vector<8x32xbf16>
    %c0_17 = arith.constant 0 : index
    %c0_18 = arith.constant 0 : index
    %28 = vector.load %arg8[%c0_17, %c0_18] : memref<32x1xbf16, #tpu.memory_space<vmem>>, vector<32x1xbf16>
    %cst_19 = arith.constant dense<0.000000e+00> : vector<8x1xf32>
    %29 = tpu.matmul %27, %28, %cst_19 {dimension_numbers = #tpu.dot_dimension_numbers<[1], [0], [0], [1], [0, 0, 1, 1], [], []>} : vector<8x32xbf16>, vector<32x1xbf16>, vector<8x1xf32> -> vector<8x1xf32>
    %c0_20 = arith.constant 0 : index
    %c0_21 = arith.constant 0 : index
    %30 = vector.load %arg9[%c0_20, %c0_21] : memref<1x1xf32, #tpu.memory_space<vmem>>, vector<1x1xf32>
    %31 = vector.broadcast %30 : vector<1x1xf32> to vector<8x1xf32>
    %32 = arith.addf %29, %31 : vector<8x1xf32>
    %c0_22 = arith.constant 0 : index
    %c0_23 = arith.constant 0 : index
    %33 = vector.load %arg10[%c0_22, %c0_23] : memref<8x1xf32, #tpu.memory_space<vmem>>, vector<8x1xf32>
    tpu.vector_store %arg10[%c0_22, %c0_23], %32 {strides = array<i32>} : memref<8x1xf32, #tpu.memory_space<vmem>>, vector<8x1xf32>,
    return
  }
  func.func @transform_0(%arg0: i32) -> (i32, i32) {
    %c0_i32 = arith.constant 0 : i32
    %c0_i32_0 = arith.constant 0 : i32
    return %arg0, %c0_i32 : i32, i32
  }
  func.func @transform_1(%arg0: i32) -> (i32, i32) {
    %c0_i32 = arith.constant 0 : i32
    %c0_i32_0 = arith.constant 0 : i32
    return %arg0, %c0_i32 : i32, i32
  }
  func.func @transform_2(%arg0: i32) -> (i32, i32) {
    %c0_i32 = arith.constant 0 : i32
    %c0_i32_0 = arith.constant 0 : i32
    %c0_i32_1 = arith.constant 0 : i32
    return %c0_i32, %c0_i32_0 : i32, i32
  }
  func.func @transform_3(%arg0: i32) -> (i32, i32) {
    %c0_i32 = arith.constant 0 : i32
    %c0_i32_0 = arith.constant 0 : i32
    %c0_i32_1 = arith.constant 0 : i32
    return %c0_i32, %c0_i32_0 : i32, i32
  }
  func.func @transform_4(%arg0: i32) -> (i32, i32) {
    %c0_i32 = arith.constant 0 : i32
    %c0_i32_0 = arith.constant 0 : i32
    %c0_i32_1 = arith.constant 0 : i32
    return %c0_i32, %c0_i32_0 : i32, i32
  }
  func.func @transform_5(%arg0: i32) -> (i32, i32) {
    %c0_i32 = arith.constant 0 : i32
    %c0_i32_0 = arith.constant 0 : i32
    %c0_i32_1 = arith.constant 0 : i32
    return %c0_i32, %c0_i32_0 : i32, i32
  }
  func.func @transform_6(%arg0: i32) -> (i32, i32) {
    %c0_i32 = arith.constant 0 : i32
    %c0_i32_0 = arith.constant 0 : i32
    %c0_i32_1 = arith.constant 0 : i32
    return %c0_i32, %c0_i32_0 : i32, i32
  }
  func.func @transform_7(%arg0: i32) -> (i32, i32) {
    %c0_i32 = arith.constant 0 : i32
    %c0_i32_0 = arith.constant 0 : i32
    %c0_i32_1 = arith.constant 0 : i32
    return %c0_i32, %c0_i32_0 : i32, i32
  }
  func.func @transform_8(%arg0: i32) -> (i32, i32) {
    %c0_i32 = arith.constant 0 : i32
    %c0_i32_0 = arith.constant 0 : i32
    %c0_i32_1 = arith.constant 0 : i32
    return %c0_i32, %c0_i32_0 : i32, i32
  }
  func.func @transform_9(%arg0: i32) -> (i32, i32) {
    %c0_i32 = arith.constant 0 : i32
    %c0_i32_0 = arith.constant 0 : i32
    return %arg0, %c0_i32 : i32, i32
  }
}

</mosaic_0001>

<bundles_post_ra>
// kernel: tpu_custom_call.1
= control target key start
LH: loop header
LB: loop body
LE: loop exit
PB: predicated region body
PF: predicated region fallthrough
CT: control target
= control target key end

     0   :  { %v424_v0 = vmov 0   ;;  %v425_v2 = vmov 0.0   ;;  %vm426_vm0 = vmmov 0   ;;  %vm50_vm1 = vcmask 1043456   ;;  %s534_s0 = inlined_call_operand.vmem [shape: s32[8,1], index: 0, kind: input, shape index: {}]   ;;  %s535_s3 = inlined_call_operand.vmem [shape: bf16[64,64], index: 3, kind: input, shape index: {}]   ;;  %s536_s2 = inlined_call_operand.vmem [shape: bf16[8,64], index: 2, kind: input, shape index: {}]   ;;  %s537_s1 = inlined_call_operand.vmem [shape: f32[8,64], index: 1, kind: input, shape index: {}]   ;;  %s538_s5 = inlined_call_operand.vmem [shape: bf16[64,32], index: 5, kind: input, shape index: {}]   ;;  %s539_s7 = inlined_call_operand.vmem [shape: bf16[32,1], index: 7, kind: input, shape index: {}]   ;;  %s540_s4 = inlined_call_operand.vmem [shape: f32[1,64], index: 4, kind: input, shape index: {}]   ;;  %s541_s8 = inlined_call_operand.<no memory space> [shape: f32[1,1], index: 8, kind: input, shape index: {}]   ;;  %s542_s6 = inlined_call_operand.vmem [shape: f32[1,32], index: 6, kind: input, shape index: {}]   ;;  %s543_s9 = inlined_call_operand.vmem [shape: f32[8,1], index: 9, kind: output, shape index: {}]  }
   0x1   :  { %413 = vset.pattern.permute.xlu0 %v424_v0  ;;  %v35_v1 = vld [vmem:[%s534_s0] sm:$0xff]  ;;  %378 = vmatprep.subr.bf16.mxu1 %v425_v2  ;;  %v414_v3 = vld [vmem:[%s535_s3 + $0x18] sm:$0xff]   ;;  %v415_v4 = vld [vmem:[%s535_s3 + $0x10] sm:$0xff]   ;;  %vm128_vm2 = vcmask 523264   ;;  %v36_v11 = vlaneseq  ;;  %vm46_vm4 = vcmask 64512   ;;  %v14_v35 = vstv %s541_s8 }
   0x2   :  { %39 = vperm.xlu0 %413, %v35_v1   ;;  %386 = vmatprep.mubr.msk.bf16.mxu1 %vm426_vm0, %v425_v2  ;;  %v45_v5 = vld [vmem:[%s536_s2] sm:$0xf]  ;;  %v416_v7 = vld [vmem:[%s535_s3 + $0x8] sm:$0xff]   ;;  %v418_v15 = vld [vmem:[%s538_s5 + $0x18] sm:$0xff]   ;;  %15 = vst [vmem:[#allocation2] sm:$0x1] %v14_v35 }
   0x3   :  { %372 = vmatprep.subr.bf16.mxu0 %v425_v2  ;;  %374 = vmatprep.mubr.msk.bf16.mxu0 %vm426_vm0, %v425_v2  ;;  %v52_v6 = vsel %vm50_vm1, %v45_v5, 0  ;;  %v417_v8 = vld [vmem:[%s535_s3] sm:$0xff]   ;;  %v37_v12 = vand.u32 127, %v36_v11  ;;  %v419_v17 = vld [vmem:[%s538_s5 + $0x10] sm:$0xff]   ;;  %v420_v18 = vld [vmem:[%s538_s5 + $0x8] sm:$0xff]   ;;  %vm289_vm5 = vcmask 261120  }
   0x4   :  { %379 = vmatpush3.bf16.msra.mxu1 %v414_v3  ;;  %373 = vmatpush3.bf16.msra.mxu0 %v52_v6  ;;  %v94_v9 = vld [vmem:[%s537_s1] sm:$0xff]  ;;  %v422_v20 = vld [vmem:[%s539_s7 + $0x8] sm:$0xff]   ;;  %vm333_vm6 = vcmask 7168  }
   0x5   :  { %380 = vmatprep.subr.bf16.mxu1 %v425_v2  ;;  %390 = vmatprep.subr.bf16.mxu0 %v425_v2  ;;  %v95_v10 = vpack.c.bf16 %v94_v9, %v94_v9  ;;  %v421_v19 = vld [vmem:[%s538_s5] sm:$0xff]  }
   0x6   :  { %v346_v26 = vld [vmem:[%s540_s4] ss:$0 sm:$0xff] }
   0x7   :  { %v423_v34 = vld [vmem:[%s539_s7] sm:$0xff]  }
   0x8   :  { %381 = vmatpush3.bf16.msra.mxu1 %v415_v4  ;;  %v347_v36 = vld [vmem:[%s542_s6] ss:$0 sm:$0xff] }
   0x9   :  { %382 = vmatprep.subr.bf16.mxu1 %v425_v2  ;;  %v353_v44 = vld [vmem:[#allocation2] ss:$0 sm:$0xff] }
   0xc   :  { %383 = vmatpush3.bf16.msra.mxu1 %v416_v7 }
   0xd   :  { %384 = vmatprep.subr.bf16.mxu1 %v425_v2 }
  0x10   :  { %385 = vmatpush3.bf16.msra.mxu1 %v417_v8 }
  0x11   :  { %402 = vmatprep.subr.bf16.mxu1 %v425_v2 }
  0x13   :  { %387 = vmatmul.mubr.msk.bf16.vlgmr.msra.gmra.mxu1 %vm128_vm2, %v95_v10 }
  0x14   :  { %406 = vmatprep.mubr.msk.bf16.mxu1 %vm426_vm0, %v425_v2  ;;  %403 = vmatpush3.bf16.msra.mxu1 %v422_v20 }
  0x15   :  { %404 = vmatprep.subr.bf16.mxu1 %v425_v2 }
  0x18   :  { %405 = vmatpush3.bf16.msra.mxu1 %v423_v34 }
  0x7d   :  { %v40_v13 = vpop.permute.xlu0 %39 }
  0x7e   :  { %vm41_vm3 = vcmp.eq.s32.totalorder %v37_v12, %v40_v13 }
  0x7f   :  { %v339_v14 = vsel %vm41_vm3, 1.0, %v425_v2 }
  0x80   :  { %v44_v16 = vpack.c.bf16 %v339_v14, %v339_v14 }
  0x82   :  { %375 = vmatmul.mubr.msk.bf16.vlgmr.msra.gmra.mxu0 %vm46_vm4, %v44_v16 }
  0x83   :  { %391 = vmatpush3.bf16.msra.mxu0 %v418_v15  ;;  %398 = vmatprep.mubr.msk.bf16.mxu0 %vm426_vm0, %v425_v2 }
  0x84   :  { %392 = vmatprep.subr.bf16.mxu0 %v425_v2 }
  0x87   :  { %393 = vmatpush3.bf16.msra.mxu0 %v419_v17 }
  0x88   :  { %394 = vmatprep.subr.bf16.mxu0 %v425_v2 }
  0x8b   :  { %395 = vmatpush3.bf16.msra.mxu0 %v420_v18 }
  0x8c   :  { %396 = vmatprep.subr.bf16.mxu0 %v425_v2 }
  0x8f   :  { %397 = vmatpush3.bf16.msra.mxu0 %v421_v19 }
  0xd3   :  { %v166_v21 = vpop.f32.mrf.mxu1 }
  0xd5   :  { %v388_v22 = vpop.f32.mrf.mxu1 }
  0xd7   :  { %v169_v23 = vpop.f32.mrf.mxu1 }
  0xd9   :  { %v389_v24 = vpop.f32.mrf.mxu1 }
 0x142   :  { %v88_v25 = vpop.f32.mrf.mxu0 }
 0x143   :  { %v167_v27 = vadd.f32 %v166_v21, %v88_v25 }
 0x144   :  { %v376_v28 = vpop.f32.mrf.mxu0 }
 0x145   :  { %v179_v29 = vadd.f32 %v346_v26, %v167_v27 }
 0x146   :  { %v91_v30 = vpop.f32.mrf.mxu0 }
 0x147   :  { %v180_v31 = vmax.f32 %v179_v29, 0.0 }
 0x148   :  { %v377_v32 = vpop.f32.mrf.mxu0 }
 0x149   :  { %v181_v33 = vpack.c.bf16 %v180_v31, %v180_v31 }
 0x14b   :  { %399 = vmatmul.mubr.msk.bf16.vlgmr.msra.gmra.mxu0 %vm128_vm2, %v181_v33 }
 0x20b   :  { %v258_v37 = vpop.f32.mrf.mxu0 }
 0x20c   :  { %v259_v38 = vadd.f32 %v347_v36, %v258_v37 }
 0x20d   :  { %v400_v39 = vpop.f32.mrf.mxu0 }
 0x20e   :  { %v264_v40 = vmax.f32 %v259_v38, 0.0 }
 0x20f   :  { %v261_v41 = vpop.f32.mrf.mxu0 }
 0x210   :  { %v265_v42 = vpack.c.bf16 %v264_v40, %v264_v40 }
 0x211   :  { %v401_v43 = vpop.f32.mrf.mxu0 }
 0x212   :  { %407 = vmatmul.mubr.msk.bf16.vlgmr.msra.gmra.mxu1 %vm289_vm5, %v265_v42 }
 0x2d2   :  { %v327_v45 = vpop.f32.mrf.mxu1 }
 0x2d3   :  { %v328_v46 = vadd.f32 %v353_v44, %v327_v45 }
 0x2d4   :  { %v408_v47 = vpop.f32.mrf.mxu1 }
 0x2d5   :  { %334 = vst.msk [vmem:[%s543_s9] sm:$0xff] %vm333_vm6, %v328_v46 }
 0x2d6   :  { %v330_v48 = vpop.f32.mrf.mxu1 }
 0x2d8   :  { %v409_v49 = vpop.f32.mrf.mxu1 }

</bundles_post_ra>
